<compile_context>
chip_gen: v6e
topology: v6e:2x2x1
jax: 0.10.0
libtpu: 0.0.40
codegen_flags: <defaults>
</compile_context>

<pallas_src>
import functools
import math

import numpy as np
import jax
import jax.numpy as jnp
from jax.experimental import pallas as pl
from jax.experimental.pallas import tpu as pltpu


_LANE = 128


# ---------------------------------------------------------------------------
# Host-side index / scatter-matrix construction (cached, vectorized numpy).
# ---------------------------------------------------------------------------

@functools.lru_cache(maxsize=None)
def _triu_gather_index_np(n: int) -> np.ndarray:
    """(n*n,) int32: flat output position i*n+j -> packed triu index k."""
    m = n * (n + 1) // 2
    iu, ju = np.triu_indices(n)
    k_of = np.zeros((n, n), dtype=np.int32)
    k_of[iu, ju] = np.arange(m, dtype=np.int32)
    k_of[ju, iu] = k_of[iu, ju]          # mirror; diagonal rewrites same slot
    return k_of.reshape(n * n)


@functools.lru_cache(maxsize=None)
def _folded_gather_index(n: int, g: int, rows: int) -> jax.Array:
    """(rows, g*n*n) int32 index into a folded (g*m)-wide row."""
    m = n * (n + 1) // 2
    base = _triu_gather_index_np(n)                                   # (nn,)
    folded = (np.arange(g, dtype=np.int32)[:, None] * m + base[None, :]).reshape(-1)
    tiled = np.ascontiguousarray(np.broadcast_to(folded, (rows, folded.size)))
    return jnp.asarray(tiled, dtype=jnp.int32)


@functools.lru_cache(maxsize=None)
def _scatter_matrix(n: int) -> jax.Array:
    """(m, n*n) one-hot scatter matrix, bf16 (0/1 are exact in bf16)."""
    m = n * (n + 1) // 2
    iu, ju = np.triu_indices(n)
    k = np.arange(m)
    S = np.zeros((m, n * n), dtype=np.float32)
    S[k, iu * n + ju] = 1.0
    S[k, ju * n + iu] = 1.0
    return jnp.asarray(S, dtype=jnp.bfloat16)


# ---------------------------------------------------------------------------
# Small helpers.
# ---------------------------------------------------------------------------

def _sublane(dtype) -> int:
    """Sublane packing for the batch axis (8 f32 / 16 bf16 / 32 int8)."""
    return max(8, 32 // jnp.dtype(dtype).itemsize)


def _fold_group(n: int) -> int:
    """Smallest g with g*n*n a multiple of 128 lanes."""
    return _LANE // math.gcd(n * n, _LANE)


def _pick_batch_tile(rows: int, w_out: int, itemsize: int, sub: int) -> int:
    """Rows/step: multiple of `sub`, <=~2 MiB output tile, >=4 grid steps if possible."""
    if rows <= sub:
        return rows
    cap = (2 * 1024 * 1024) // max(1, w_out * itemsize)
    cap = max(sub, (cap // sub) * sub)
    quarter = max(sub, (rows // 4) // sub * sub)     # aim for >= 4 pipelined steps
    tb = min(cap, quarter, 512)
    return max(sub, min(tb, (rows // sub) * sub))


def _is_tracer(x) -> bool:
    tracer_cls = getattr(jax.core, "Tracer", None)
    return tracer_cls is not None and isinstance(x, tracer_cls)


# ---------------------------------------------------------------------------
# Kernels.
# ---------------------------------------------------------------------------

def _gather_kernel(idx_ref, x_ref, o_ref):
    # idx_ref: (sub, W_out) int32 (resident, DMA'd once); x_ref: (tb, W_in);
    # o_ref: (tb, W_out). Process one sublane group at a time, reusing the
    # same index vregs; no scratch, no zero fill, no broadcast materialization.
    sub = idx_ref.shape[0]
    idx = idx_ref[...]
    nchunks = o_ref.shape[0] // sub

    def body(c, carry):
        r = pl.multiple_of(c * sub, sub)
        o_ref[pl.ds(r, sub), :] = jnp.take_along_axis(
            x_ref[pl.ds(r, sub), :], idx, axis=-1)
        return carry

    jax.lax.fori_loop(0, nchunks, body, 0, unroll=True)


def _matmul_kernel(x_ref, s_ref, o_ref):
    # Exact one-hot scatter on the otherwise-idle MXU. precision=HIGHEST keeps
    # f32 inputs exact (each output element is x * 1.0 plus zeros).
    x = x_ref[...]
    s = s_ref[...].astype(x.dtype)
    o_ref[...] = jax.lax.dot(
        x, s,
        precision=jax.lax.Precision.HIGHEST,
        preferred_element_type=jnp.float32,
    ).astype(o_ref.dtype)


# ---------------------------------------------------------------------------
# pallas_call builders.
# ---------------------------------------------------------------------------

def _gather_forward(x: jax.Array, n: int) -> jax.Array:
    B, m = x.shape
    nn = n * n
    g = _fold_group(n)
    sub = _sublane(x.dtype)

    quantum = sub * g                      # rows per folded sublane group
    B_pad = ((B + quantum - 1) // quantum) * quantum
    if B_pad != B:
        x = jnp.pad(x, ((0, B_pad - B), (0, 0)))
    Bg = B_pad // g
    w_in, w_out = g * m, g * nn            # w_out % 128 == 0 -> lane-dense stores
    xf = x.reshape(Bg, w_in)
    fidx = _folded_gather_index(n, g, sub)

    tb = _pick_batch_tile(Bg, w_out, x.dtype.itemsize, sub)
    itemsize = x.dtype.itemsize
    bytes_accessed = int(xf.size * itemsize + fidx.size * 4 + Bg * w_out * itemsize)

    out = pl.pallas_call(
        _gather_kernel,
        out_shape=jax.ShapeDtypeStruct((Bg, w_out), x.dtype),
        grid_spec=pltpu.PrefetchScalarGridSpec(
            num_scalar_prefetch=0,
            grid=(pl.cdiv(Bg, tb),),
            in_specs=[
                pl.BlockSpec((sub, w_out), lambda b: (0, 0)),   # idx, resident
                pl.BlockSpec((tb, w_in), lambda b: (b, 0)),     # x tile
            ],
            out_specs=pl.BlockSpec((tb, w_out), lambda b: (b, 0)),
        ),
        compiler_params=pltpu.CompilerParams(
            dimension_semantics=("parallel",)),
        cost_estimate=pl.CostEstimate(
            flops=int(B_pad * nn), transcendentals=0,
            bytes_accessed=bytes_accessed),
    )(fidx, xf)
    return out.reshape(B_pad, n, n)[:B]


def _matmul_forward(x: jax.Array, n: int) -> jax.Array:
    B, m = x.shape
    nn = n * n
    sub = _sublane(x.dtype)
    tb = _pick_batch_tile(B, nn, x.dtype.itemsize, sub)
    tn = nn if nn <= 2048 else 2048        # tile S over nn for large n
    S = _scatter_matrix(n)
    bytes_accessed = int(x.size * x.dtype.itemsize + S.size * 2
                         + B * nn * x.dtype.itemsize)

    out = pl.pallas_call(
        _matmul_kernel,
        out_shape=jax.ShapeDtypeStruct((B, nn), x.dtype),
        grid_spec=pltpu.PrefetchScalarGridSpec(
            num_scalar_prefetch=0,
            grid=(pl.cdiv(B, tb), pl.cdiv(nn, tn)),
            in_specs=[
                pl.BlockSpec((tb, m), lambda b, j: (b, 0)),     # x tile
                pl.BlockSpec((m, tn), lambda b, j: (0, j)),     # S tile (bf16)
            ],
            out_specs=pl.BlockSpec((tb, tn), lambda b, j: (b, j)),
        ),
        compiler_params=pltpu.CompilerParams(
            dimension_semantics=("parallel", "parallel")),
        cost_estimate=pl.CostEstimate(
            flops=int(2 * B * m * nn), transcendentals=0,
            bytes_accessed=bytes_accessed),
    )(x, S)
    return out.reshape(B, n, n)


# ---------------------------------------------------------------------------
# One-time, concrete-input probe of the gather lowering (never under tracing).
# ---------------------------------------------------------------------------

_GATHER_OK: dict = {}


def _probe_gather(n: int, dtype_name: str) -> bool:
    try:
        dtype = jnp.dtype(dtype_name)
        g = _fold_group(n)
        sub = _sublane(dtype)
        m = n * (n + 1) // 2
        B = sub * g + 3                    # also exercises pad + ragged writeback
        x = (jnp.arange(B * m, dtype=jnp.float32) % 257.0).astype(dtype).reshape(B, m)
        out = np.asarray(jax.block_until_ready(_gather_forward(x, n)))
        ref = np.asarray(x)[:, _triu_gather_index_np(n)].reshape(B, n, n)
        return bool(np.array_equal(out, np.asarray(ref)))
    except Exception:
        return False


def _gather_supported(n: int, dtype_name: str) -> bool:
    key = (n, dtype_name)
    hit = _GATHER_OK.get(key)
    if hit is None:
        hit = _probe_gather(n, dtype_name)
        _GATHER_OK[key] = hit
    return hit


# ---------------------------------------------------------------------------
# Public wrapper (forward of SPDUnVectorize).
# ---------------------------------------------------------------------------

def spd_unvectorize(x: jax.Array) -> jax.Array:
    """(B, m) packed upper-triangular vectors -> (B, n, n) symmetric matrices."""
    if x.ndim != 2:
        raise ValueError("expected a 2-D input (batch, n*(n+1)/2)")
    B, m = x.shape
    n = (math.isqrt(1 + 8 * m) - 1) // 2
    if n * (n + 1) // 2 != m:
        raise ValueError("input width must be n(n+1)/2")

    dtype_name = jnp.dtype(x.dtype).name
    if not _is_tracer(x):
        use_gather = _gather_supported(n, dtype_name)
    else:
        # Under tracing: never run the probe; reuse a cached decision if any,
        # otherwise take the always-lowerable MXU-scatter path for this trace.
        use_gather = _GATHER_OK.get((n, dtype_name), False)

    if use_gather:
        return _gather_forward(x, n)
    return _matmul_forward(x, n)


# ---------------------------------------------------------------------------
# Self-test.
# ---------------------------------------------------------------------------

def _reference(x: np.ndarray) -> np.ndarray:
    """Pure-numpy re-implementation of the torch forward, for verification."""
    B, m = x.shape
    n = (math.isqrt(1 + 8 * m) - 1) // 2
    out = np.zeros((B, n, n), dtype=x.dtype)
    iu = np.triu_indices(n)
    di = np.diag_indices(n)
    for k in range(B):
        out[k][iu] = x[k]
        out[k] = out[k] + out[k].T
        out[k][di] /= 2
    return out


if __name__ == "__main__":
    key = jax.random.PRNGKey(0)
    # Small cases: the module's own example size, a batch that needs padding /
    # ragged writeback, and a multi-grid-step case.
    cases = [(2, 8), (13, 8), (40, 16)]
    for B, n in cases:
        m = n * (n + 1) // 2
        key, sub_key = jax.random.split(key)
        x = jax.random.normal(sub_key, (B, m), dtype=jnp.float32)
        y = jax.block_until_ready(spd_unvectorize(x))
        y_ref = _reference(np.asarray(x))
        np.testing.assert_allclose(np.asarray(y), y_ref, rtol=1e-6, atol=1e-6)
    print("KERNEL_OK")
</pallas_src>

<mosaic_0001>
module attributes {stable_mosaic.version = 11 : i64} {
  func.func @_gather_kernel(%arg0: i32, %arg1: memref<8x128xi32, #tpu.memory_space<vmem>>, %arg2: memref<8x72xf32, #tpu.memory_space<vmem>>, %arg3: memref<8x128xf32, #tpu.memory_space<vmem>>) attributes {dimension_semantics = [#tpu.dimension_semantics<parallel>], iteration_bounds = array<i64: 2>, scalar_prefetch = 0 : i64, scratch_operands = 0 : i64, tpu.core_type = #tpu.core_type<tc>, window_params = [{pipeline_mode = #tpu.pipeline_mode<synchronous>, transform_indices = @transform_0, window_bounds = array<i64: 8, 128>}, {transform_indices = @transform_1, window_bounds = array<i64: 8, 72>}, {transform_indices = @transform_2, window_bounds = array<i64: 8, 128>}]} {
    %c0 = arith.constant 0 : index
    %c0_0 = arith.constant 0 : index
    %0 = vector.load %arg1[%c0, %c0_0] : memref<8x128xi32, #tpu.memory_space<vmem>>, vector<8x128xi32>
    %c0_i32 = arith.constant 0 : i32
    %c8_i32 = arith.constant 8 : i32
    %1 = arith.muli %c0_i32, %c8_i32 : i32
    %2 = tpu.assume_multiple %1, 8 : i32
    %3 = arith.index_cast %2 : i32 to index
    %c0_1 = arith.constant 0 : index
    %4 = vector.load %arg2[%3, %c0_1] : memref<8x72xf32, #tpu.memory_space<vmem>>, vector<8x72xf32>
    %c0_i32_2 = arith.constant 0 : i32
    %5 = vector.broadcast %c0_i32_2 : i32 to vector<8x128xi32>
    %6 = arith.cmpi slt, %0, %5 : vector<8x128xi32>
    %c72_i32 = arith.constant 72 : i32
    %7 = vector.broadcast %c72_i32 : i32 to vector<8x128xi32>
    %8 = arith.addi %0, %7 : vector<8x128xi32>
    %9 = arith.select %6, %8, %0 : vector<8x128xi1>, vector<8x128xi32>
    %10 = vector.shape_cast %9 : vector<8x128xi32> to vector<8x128x1xi32>
    %11 = vector.shape_cast %10 : vector<8x128x1xi32> to vector<8x128xi32>
    %12 = tpu.dynamic_gather %4[%11] in [1] : vector<8x72xf32>, vector<8x128xi32> -> vector<8x128xf32>
    %13 = arith.index_cast %2 : i32 to index
    %c0_3 = arith.constant 0 : index
    %14 = vector.load %arg3[%13, %c0_3] : memref<8x128xf32, #tpu.memory_space<vmem>>, vector<8x128xf32>
    tpu.vector_store %arg3[%13, %c0_3], %12 {strides = array<i32>} : memref<8x128xf32, #tpu.memory_space<vmem>>, vector<8x128xf32>,
    %c1_i32 = arith.constant 1 : i32
    return
  }
  func.func @transform_0(%arg0: i32) -> (i32, i32) {
    %c0_i32 = arith.constant 0 : i32
    %c0_i32_0 = arith.constant 0 : i32
    %c0_i32_1 = arith.constant 0 : i32
    return %c0_i32, %c0_i32_0 : i32, i32
  }
  func.func @transform_1(%arg0: i32) -> (i32, i32) {
    %c0_i32 = arith.constant 0 : i32
    %c0_i32_0 = arith.constant 0 : i32
    return %arg0, %c0_i32 : i32, i32
  }
  func.func @transform_2(%arg0: i32) -> (i32, i32) {
    %c0_i32 = arith.constant 0 : i32
    %c0_i32_0 = arith.constant 0 : i32
    return %arg0, %c0_i32 : i32, i32
  }
}

module attributes {stable_mosaic.version = 11 : i64} {
  func.func @_matmul_kernel(%arg0: i32, %arg1: i32, %arg2: memref<2x36xf32, #tpu.memory_space<vmem>>, %arg3: memref<36x64xbf16, #tpu.memory_space<vmem>>, %arg4: memref<2x64xf32, #tpu.memory_space<vmem>>) attributes {dimension_semantics = [#tpu.dimension_semantics<parallel>, #tpu.dimension_semantics<parallel>], iteration_bounds = array<i64: 1, 1>, scalar_prefetch = 0 : i64, scratch_operands = 0 : i64, tpu.core_type = #tpu.core_type<tc>, window_params = [{transform_indices = @transform_0, window_bounds = array<i64: 2, 36>}, {transform_indices = @transform_1, window_bounds = array<i64: 36, 64>}, {transform_indices = @transform_2, window_bounds = array<i64: 2, 64>}]} {
    %c0 = arith.constant 0 : index
    %c0_0 = arith.constant 0 : index
    %0 = vector.load %arg2[%c0, %c0_0] : memref<2x36xf32, #tpu.memory_space<vmem>>, vector<2x36xf32>
    %c0_1 = arith.constant 0 : index
    %c0_2 = arith.constant 0 : index
    %1 = vector.load %arg3[%c0_1, %c0_2] : memref<36x64xbf16, #tpu.memory_space<vmem>>, vector<36x64xbf16>
    %2 = arith.extf %1 : vector<36x64xbf16> to vector<36x64xf32>
    %cst = arith.constant dense<0.000000e+00> : vector<2x64xf32>
    %3 = tpu.matmul %0, %2, %cst {dimension_numbers = #tpu.dot_dimension_numbers<[1], [0], [0], [1], [0, 0, 1, 1], [], []>, precision = #tpu.contract_precision<fp32>} : vector<2x36xf32>, vector<36x64xf32>, vector<2x64xf32> -> vector<2x64xf32>
    %c0_3 = arith.constant 0 : index
    %c0_4 = arith.constant 0 : index
    %4 = vector.load %arg4[%c0_3, %c0_4] : memref<2x64xf32, #tpu.memory_space<vmem>>, vector<2x64xf32>
    tpu.vector_store %arg4[%c0_3, %c0_4], %3 {strides = array<i32>} : memref<2x64xf32, #tpu.memory_space<vmem>>, vector<2x64xf32>,
    return
  }
  func.func @transform_0(%arg0: i32, %arg1: i32) -> (i32, i32) {
    %c0_i32 = arith.constant 0 : i32
    %c0_i32_0 = arith.constant 0 : i32
    return %arg0, %c0_i32 : i32, i32
  }
  func.func @transform_1(%arg0: i32, %arg1: i32) -> (i32, i32) {
    %c0_i32 = arith.constant 0 : i32
    %c0_i32_0 = arith.constant 0 : i32
    return %c0_i32, %arg1 : i32, i32
  }
  func.func @transform_2(%arg0: i32, %arg1: i32) -> (i32, i32) {
    %c0_i32 = arith.constant 0 : i32
    return %arg0, %arg1 : i32, i32
  }
}

</mosaic_0001>

<bundles_post_ra>
// kernel: tpu_custom_call.1
= control target key start
LH: loop header
LB: loop body
LE: loop exit
PB: predicated region body
PF: predicated region fallthrough
CT: control target
= control target key end

     0   :  { %7 = vsyncpa [#allocation3], 0  ;;  %s663_s0 = inlined_call_operand.hbm [shape: s32[8,128], index: 0, kind: input, shape index: {}]   ;;  %s664_s1 = inlined_call_operand.hbm [shape: f32[16,72], index: 1, kind: input, shape index: {}]   ;;  %s665_s2 = inlined_call_operand.hbm [shape: f32[16,128], index: 2, kind: output, shape index: {}]  }
   0x1   :  { %8 = vsyncpa [#allocation6], 0 }
   0x2   :  { %10 = vsyncpa [#allocation6 + $0x1], 0 }
   0x3   :  { %11 = vsyncpa [#allocation4], 0 }
   0x4   :  { %13 = vsyncpa [#allocation4 + $0x1], 0  ;;  %s491_s9 = smov 0   ;;  %s493_s10 = smov 0  }
   0x5   :  { %s495_s11 = smov 0   ;;  %s497_s12 = smov 0  }
   0x6 LB: > { %s512_s13 = sadd.s32 4294967295, %s471_s12   ;;  %s277_s14 = sadd.s32 4294967294, %s471_s12   ;;  %s471_s12 = sphi %s497_s12, %s688_s12   ;;  %s467_s11 = sphi %s495_s11, %s687_s11   ;;  %s463_s10 = sphi %s493_s10, %s686_s10   ;;  %s459_s9 = sphi %s491_s9, %s685_s9  }
   0x7   : > { %p60_p0 = scmp.ne.s32.totalorder %s463_s10, %s459_s9  ;;  %p666_p1 = scmp.eq.s32.totalorder %s512_s13, 0 }
   0x8   : > { %p90_p3 = scmp.eq.s32.totalorder %s277_s14, 1  ;;  %p278_p5 = scmp.ge.s32.totalorder %s471_s12, 1 }
   0x9   : > { %p521_p4 = por %p666_p1, %p60_p0  ;;  %p97_p7 = scmp.lt.s32.totalorder %s471_s12, 3 }
   0xa   : > { %p526_p6 = por %p90_p3, %p60_p0  ;;  %s473_s18 = smov [#allocation2]  }
   0xb   : > { %s670_s15 = scalar_select %p521_p4, 1, 0 }
   0xc   : > { %s671_s16 = scalar_select %p526_p6, 1, 0 }
   0xd   : > { %p531_p8 = pnand %p278_p5, %p97_p7  ;;  %s110_s19 = sshll.u32 %s473_s18, 4  ;;  %s111_s19 = int_to_ptr.vmem [resolvable:$true] %s110_s19 }
   0xe   : > { %s539_s20 = sadd.s32 1, %s471_s12   ;;  %s47_s24 = sadd.s32 1, %s467_s11 }
   0xf   : > { %s672_s17 = scalar_select %p531_p8, 1, 0 }
  0x10   : > { %p299_p10 = pneg %p531_p8  ;;  %s44_s22 = ssub.s32 %s471_s12, %s539_s20 }
  0x11   : > { %p549_p12 = scmp.eq.s32.totalorder %s44_s22, 0  ;;  %p54_p13 = scmp.ne.s32.totalorder %s467_s11, %s463_s10 }
  0x12   : > { %p543_p11 = pnand %p299_p10, %p666_p1  ;;  %s360_s25 = scalar_lea.vmem %s111_s19, 128 }
  0x13   : > { %p361_p3 = scmp.ne.s32.totalorder %s111_s19, %s360_s25  ;;  %p368_p9 = scmp.lt.s32.totalorder %s111_s19, %s111_s19 }
  0x14   : > { %p351_p0 = pneg %p543_p11  ;;  %p369_p2 = scmp.lt.s32.totalorder %s360_s25, %s360_s25 }
  0x16   : > { %p363_p5 = pnand %p361_p3, %p351_p0  ;;  %p370_p10 = por %p369_p2, %p368_p9 }
  0x18   : > { %p364_p7 = pneg %p363_p5 }
  0x1a   : > { %p371_p1 = pnand %p370_p10, %p364_p7 }
  0x1c   : > { %374 = shalt.err (!%p371_p1)
}
  0x1d   : > { %302 = dma.hbm_to_vmem [thread:$0]  (!%p543_p11), %s663_s0, 128, %s111_s19, [#allocation3]  }
  0x1e   : > { %s566_s28 = scalar_select %p549_p12, %s467_s11, %s47_s24  }
  0x1f   : > { %p55_p1 = scmp.eq.s32.totalorder %s471_s12, 0  ;;  %p675_p2 = scmp.eq.s32.totalorder %s512_s13, 1 }
  0x20   : > { %p312_p0 = scmp.lt.s32.totalorder %s471_s12, 2  ;;  %s121_s30 = sand.u32 1, %s467_s11  }
  0x21   : > { %p574_p9 = por %p675_p2, %p54_p13  ;;  %p56_p3 = por %p55_p1, %p54_p13 }
  0x22   : > { %s281_s3 = sshll.u32 %s121_s30, 3  ;;  %s282_s4 = sshll.u32 %s471_s12, 7 }
  0x23   : > { %s676_s29 = scalar_select %p574_p9, 1, 0 }
  0x24   : > { %s587_s7 = scalar_lea.hbm %s664_s1, %s282_s4  ;;  %s125_s8 = scalar_lea.vmem [#allocation5], %s281_s3 }
  0x25   : > { %s132_s14 = sshll.u32 %s125_s8, 4  ;;  %p589_p11 = pnand %p312_p0, %p56_p3  ;;  %s133_s14 = int_to_ptr.vmem [resolvable:$true] %s132_s14 }
  0x26   : > { %s122_s19 = scalar_lea.sflag [#allocation6], %s121_s30  ;;  %s375_s21 = scalar_lea.hbm %s587_s7, 128 }
  0x27   : > { %p376_p12 = scmp.ne.s32.totalorder %s587_s7, %s375_s21  ;;  %p377_p13 = pneg %p589_p11 }
  0x28   : > { %s380_s24 = scalar_lea.hbm %s664_s1, 256  ;;  %p381_p10 = scmp.lt.s32.totalorder %s587_s7, %s664_s1 }
  0x29   : > { %p378_p5 = pnand %p377_p13, %p376_p12  ;;  %p382_p1 = scmp.lt.s32.totalorder %s380_s24, %s375_s21 }
  0x2b   : > { %p379_p7 = pneg %p378_p5  ;;  %p383_p2 = por %p382_p1, %p381_p10 }
  0x2d   : > { %p384_p0 = pnand %p383_p2, %p379_p7 }
  0x2f   : > { %387 = shalt.err (!%p384_p0)
}
  0x30   : > { %s388_s27 = scalar_lea.vmem %s133_s14, 128  ;;  %s474_s30 = smov [#allocation5]  }
  0x31   : > { %p389_p3 = scmp.ne.s32.totalorder %s133_s14, %s388_s27  ;;  %s393_s3 = sshll.u32 %s474_s30, 4  ;;  %s394_s3 = int_to_ptr.vmem [resolvable:$false] %s393_s3 }
  0x32   : > { %s395_s4 = scalar_lea.vmem %s394_s3, 256  ;;  %p396_p12 = scmp.lt.s32.totalorder %s133_s14, %s394_s3 }
  0x33   : > { %p391_p6 = pnand %p389_p3, %p377_p13  ;;  %p397_p5 = scmp.lt.s32.totalorder %s395_s4, %s388_s27 }
  0x35   : > { %p392_p9 = pneg %p391_p6  ;;  %p398_p4 = por %p397_p5, %p396_p12 }
  0x37   : > { %p399_p8 = pnand %p398_p4, %p392_p9 }
  0x39   : > { %402 = shalt.err (!%p399_p8)
}
  0x3a   : > { %306 = dma.hbm_to_vmem [thread:$0]  (!%p589_p11), %s587_s7, 128, %s133_s14, %s122_s19  }
  0x3b   : > { %p678_p7 = scmp.ne.s32.totalorder %s672_s17, 0 }
  0x3c   : > { %p679_p10 = scmp.eq.s32.totalorder (!%p678_p7), %s512_s13, 0 }
  0x3d   : > { %141 = sbr.rel (%p678_p7) target bundleno = 216 (0xd8), region = 28 }
  0x42   : > { %446 = dma.done.wait (%p679_p10), [#allocation3], 128   ;;  %p680_p6 = pmov %p679_p10 }
  0x43   : > { %s614_s5 = sand.u32 1, %s463_s10   ;;  %p681_p4 = scmp.ne.s32.totalorder %s670_s15, 0 }
  0x44   : > { %448 = vsyncadd (%p680_p6), [#allocation3], 4294967168  ;;  %s285_s6 = sshll.u32 %s614_s5, 3  ;;  %s148_s8 = scalar_lea.sflag [#allocation6], %s614_s5 }
  0x45   : > { %s151_s18 = scalar_lea.vmem [#allocation5], %s285_s6 }
  0x46   : > { %450 = dma.done.wait (%p681_p4), %s148_s8, 128  }
  0x47   : > { %452 = vsyncadd (%p681_p4), %s148_s8, 4294967168  ;;  %v172_v0 = vld [vmem:[#allocation2] sm:$0xff]  ;;  %v173_v3 = vld [vmem:[%s151_s18] sm:$0xff]  ;;  %s171_s17 = scalar_lea.vmem [#allocation7], %s285_s6  ;;  %s288_s14 = sshll.u32 %s512_s13, 7 }
  0x48   : > { %vm174_vm0 = vcmp.lt.s32.totalorder %v172_v0, 0  ;;  %v175_v1 = vadd.s32 72, %v172_v0  ;;  %s195_s7 = sshll.u32 %s171_s17, 4  ;;  %s193_s15 = scalar_lea.hbm %s665_s2, %s288_s14  ;;  %s623_s7 = int_to_ptr.vmem [resolvable:$true] %s195_s7 }
  0x49   : > { %s182_s22 = scalar_lea.sflag [#allocation4], %s614_s5  ;;  %s403_s23 = scalar_lea.vmem %s623_s7, 128 }
  0x4a   : > { %v176_v2 = vsel %vm174_vm0, %v175_v1, %v172_v0  ;;  %p404_p8 = scmp.ne.s32.totalorder %s623_s7, %s403_s23  ;;  %p682_p9 = scmp.ne.s32.totalorder %s676_s29, 0 }
  0x4b   : > { %348 = vset.pattern.permute.xlu0 %v176_v2  ;;  %s475_s24 = smov [#allocation7]  }
  0x4c   : > { %p405_p11 = pnand %p404_p8, %p682_p9  ;;  %s407_s25 = sshll.u32 %s475_s24, 4  ;;  %s408_s25 = int_to_ptr.vmem [resolvable:$false] %s407_s25 }
  0x4d   : > { %s409_s13 = scalar_lea.vmem %s408_s25, 256  ;;  %p410_p1 = scmp.lt.s32.totalorder %s623_s7, %s408_s25 }
  0x4e   : > { %p406_p13 = pneg %p405_p11  ;;  %p411_p2 = scmp.lt.s32.totalorder %s409_s13, %s403_s23 }
  0x4f   : > { %178 = vperm.xlu0 %348, %v173_v3  }
  0x50   : > { %p412_p0 = por %p411_p2, %p410_p1 }
  0x52   : > { %p413_p3 = pnand %p412_p0, %p406_p13 }
  0xca   : > { %v179_v4 = vpop.permute.xlu0 %178 }
  0xcb   : > { %180 = vst [vmem:[%s171_s17] sm:$0xff] %v179_v4 }
  0xcc   : > { %416 = shalt.err (!%p413_p3)
}
  0xcd   : > { %s417_s26 = scalar_lea.hbm %s193_s15, 128  ;;  %s421_s3 = scalar_lea.hbm %s665_s2, 256 }
  0xce   : > { %p418_p12 = scmp.ne.s32.totalorder %s193_s15, %s417_s26  ;;  %p422_p10 = scmp.lt.s32.totalorder %s193_s15, %s665_s2 }
  0xcf   : > { %p423_p6 = scmp.lt.s32.totalorder %s421_s3, %s417_s26 }
  0xd0   : > { %p419_p5 = pnand %p418_p12, %p682_p9 }
  0xd1   : > { %p424_p4 = por %p423_p6, %p422_p10 }
  0xd2   : > { %p420_p7 = pneg %p419_p5 }
  0xd4   : > { %p425_p8 = pnand %p424_p4, %p420_p7 }
  0xd6   : > { %428 = shalt.err (!%p425_p8)
}
  0xd7   : > { %297 = dma.vmem_to_hbm [thread:$0]  (%p682_p9), %s623_s7, 128, %s193_s15, %s182_s22  }
  0xd8 PF: > { %s207_s6 = sand.u32 1, %s459_s9   ;;  %p683_p11 = scmp.ne.s32.totalorder %s671_s16, 0 }
  0xd9   : > { %p684_p13 = scmp.ge.s32.totalorder %s471_s12, 2  ;;  %s208_s8 = scalar_lea.sflag [#allocation4], %s207_s6 }
  0xdb   : > { %p308_p1 = pnand %p684_p13, %p683_p11 }
  0xdd   : > { %p309_p2 = pneg %p308_p1 }
  0xdf   : > { %454 = dma.done.wait (%p309_p2), %s208_s8, 128  }
  0xe0   : > { %456 = vsyncadd (%p309_p2), %s208_s8, 4294967168  ;;  %p16_p0 = scmp.ge.s32.totalorder %s539_s20, 4   ;;  %s685_s9 = smov %s463_s10 }
  0xe1   : > { %s686_s10 = smov %s467_s11  ;;  %s687_s11 = smov %s566_s28 }
  0xe2   : > { %s688_s12 = smov %s539_s20  ;;  %18 = sbr.rel (!%p16_p0) target bundleno = 6 (0x6), region = 78 }
  0xe7   :  { %213 = vsyncpa [#allocation3], 1 }
  0xe8   :  { %215 = vsyncpa [#allocation3 + $0x1], 1 }
  0xe9   :  { %216 = vsyncpa [#allocation6], 1 }
  0xea   :  { %218 = vsyncpa [#allocation6 + $0x1], 1 }
  0xeb   :  { %219 = vsyncpa [#allocation4], 1 }
  0xec   :  { %221 = vsyncpa [#allocation4 + $0x1], 1 }

// kernel: tpu_custom_call.1
= control target key start
LH: loop header
LB: loop body
LE: loop exit
PB: predicated region body
PF: predicated region fallthrough
CT: control target
= control target key end

     0   :  { %7 = vsyncpa [#allocation3], 0  ;;  %s890_s0 = inlined_call_operand.hbm [shape: f32[2,36], index: 0, kind: input, shape index: {}]   ;;  %s891_s1 = inlined_call_operand.hbm [shape: bf16[36,64], index: 1, kind: input, shape index: {}]   ;;  %s892_s2 = inlined_call_operand.hbm [shape: f32[2,64], index: 2, kind: output, shape index: {}]  }
   0x1   :  { %8 = vsyncpa [#allocation6], 0 }
   0x2   :  { %9 = vsyncpa [#allocation4], 0  ;;  %s748_s9 = smov [#allocation2]   ;;  %s749_s11 = smov [#allocation5]  }
   0x3   :  { %s16_s10 = sshll.u32 %s748_s9, 4  ;;  %s25_s12 = sshll.u32 %s749_s11, 4  ;;  %s17_s10 = int_to_ptr.vmem [resolvable:$true] %s16_s10  ;;  %s26_s12 = int_to_ptr.vmem [resolvable:$true] %s25_s12 }
   0x4   :  { %s690_s13 = scalar_lea.vmem %s17_s10, 32  ;;  %p695_p1 = scmp.lt.s32.totalorder %s17_s10, %s17_s10 }
   0x5   :  { %p691_p0 = scmp.ne.s32.totalorder %s17_s10, %s690_s13  ;;  %p696_p2 = scmp.lt.s32.totalorder %s690_s13, %s690_s13 }
   0x7   :  { %p697_p3 = por %p696_p2, %p695_p1 }
   0x9   :  { %p698_p4 = pnand %p697_p3, %p691_p0 }
   0xb   :  { %701 = shalt.err (!%p698_p4)
}
   0xc   :  { %19 = dma.hbm_to_vmem [thread:$0]  %s890_s0, 32, %s17_s10, [#allocation3]  }
   0xd   :  { %s710_s16 = scalar_lea.vmem %s26_s12, 320  ;;  %p715_p6 = scmp.lt.s32.totalorder %s26_s12, %s26_s12 }
   0xe   :  { %p711_p5 = scmp.ne.s32.totalorder %s26_s12, %s710_s16  ;;  %p716_p7 = scmp.lt.s32.totalorder %s710_s16, %s710_s16 }
  0x10   :  { %p717_p8 = por %p716_p7, %p715_p6 }
  0x12   :  { %p718_p9 = pnand %p717_p8, %p711_p5 }
  0x14   :  { %721 = shalt.err (!%p718_p9)
}
  0x15   :  { %s750_s17 = smov 64   ;;  %s751_s18 = smov 4  }
  0x16   :  { %31 = dma.hbm_to_vmem [thread:$0]  %s891_s1, 320, %s26_s12, [#allocation6], %s750_s17, %s750_s17, %s751_s18  }
  0x17   :  { %742 = dma.done.wait [#allocation3], 32  }
  0x18   :  { %743 = vsyncadd [#allocation3], 4294967264 }
  0x19   :  { %744 = dma.done.wait [#allocation6], 320  }
  0x1a   :  { %745 = vsyncadd [#allocation6], 4294966976  ;;  %v752_v0 = vmov 0.0   ;;  %vm753_vm0 = vmmov 0   ;;  %vm49_vm1 = vcmask 293888   ;;  %vm53_vm2 = vcmask 1043456  }
  0x1b   :  { %597 = vmatprep.subr.mxu0 %v752_v0  ;;  %610 = vmatprep.subr.mxu1 %v752_v0  ;;  %v43_v1 = vld [vmem:[#allocation5 + $0x10] sm:$0x3]  ;;  %v560_v2 = vld [vmem:[#allocation5 + $0x8] sm:$0xff]   ;;  %v553_v3 = vld [vmem:[#allocation5] sm:$0xff]   ;;  %s754_s0 = smov [#allocation7]   ;;  %vm531_vm3 = vcmask 517120  }
  0x1c   :  { %607 = vmatprep.mubr.msk.f32.mxu0 %vm753_vm0, %v752_v0  ;;  %620 = vmatprep.mubr.msk.f32.mxu1 %vm753_vm0, %v752_v0  ;;  %v782_v4 = vunpack.c.l.bf16 %v43_v1  ;;  %v784_v5 = vunpack.c.h.bf16 %v560_v2  ;;  %v786_v6 = vunpack.c.l.bf16 %v560_v2  ;;  %v788_v7 = vunpack.c.h.bf16 %v553_v3  ;;  %v38_v8 = vld [vmem:[#allocation2] sm:$0x3]  ;;  %s539_s1 = sshll.u32 %s754_s0, 4  ;;  %s540_s1 = int_to_ptr.vmem [resolvable:$true] %s539_s1 }
  0x1d   :  { %v790_v9 = vunpack.c.l.bf16 %v553_v3  ;;  %v51_v10 = vsel %vm49_vm1, %v38_v8, 0  ;;  %s722_s21 = scalar_lea.vmem %s540_s1, 32  ;;  %p727_p11 = scmp.lt.s32.totalorder %s540_s1, %s540_s1 }
  0x1e   :  { %598 = vmatpush3.msk.msra.mxu0 %vm53_vm2, %v782_v4  ;;  %v55_v11 = vsel %vm53_vm2, %v782_v4, 0  ;;  %v796_v12 = vand.u32 4294901760, %v51_v10  ;;  %v800_v13 = vsub.f32 %v784_v5, %v784_v5  ;;  %v804_v14 = vsub.f32 %v786_v6, %v786_v6  ;;  %p723_p10 = scmp.ne.s32.totalorder %s540_s1, %s722_s21  ;;  %p728_p12 = scmp.lt.s32.totalorder %s722_s21, %s722_s21 }
  0x1f   :  { %599 = vmatprep.subr.mxu0 %v752_v0  ;;  %v157_v15 = vsub.f32 %v55_v11, %v55_v11  ;;  %v809_v16 = vsub.f32 %v788_v7, %v788_v7  ;;  %v813_v17 = vsub.f32 %v790_v9, %v790_v9 }
  0x20   :  { %600 = vmatpush3.msra.mxu0 %v784_v5  ;;  %v817_v18 = vsub.f32 %v51_v10, %v796_v12  ;;  %v164_v19 = vand.u32 4294901760, %v800_v13  ;;  %v170_v20 = vand.u32 4294901760, %v804_v14  ;;  %p729_p13 = por %p728_p12, %p727_p11 }
  0x21   :  { %601 = vmatprep.subr.mxu0 %v752_v0  ;;  %v158_v21 = vand.u32 4294901760, %v157_v15  ;;  %v176_v22 = vand.u32 4294901760, %v809_v16  ;;  %v182_v27 = vand.u32 4294901760, %v813_v17 }
  0x22   :  { %602 = vmatpush3.msra.mxu0 %v786_v6  ;;  %v125_v23 = vand.u32 4294901760, %v817_v18  ;;  %v165_v24 = vsub.f32 %v800_v13, %v164_v19  ;;  %v171_v26 = vsub.f32 %v804_v14, %v170_v20  ;;  %p730_p0 = pnand %p729_p13, %p723_p10 }
  0x23   :  { %603 = vmatprep.subr.mxu0 %v752_v0  ;;  %v159_v25 = vsub.f32 %v157_v15, %v158_v21  ;;  %v177_v31 = vsub.f32 %v809_v16, %v176_v22  ;;  %v183_v34 = vsub.f32 %v813_v17, %v182_v27 }
  0x24   :  { %604 = vmatpush3.msra.mxu0 %v788_v7  ;;  %v126_v28 = vsub.f32 %v817_v18, %v125_v23  ;;  %v166_v30 = vand.u32 4294901760, %v165_v24  ;;  %v172_v33 = vand.u32 4294901760, %v171_v26 }
  0x25   :  { %605 = vmatprep.subr.mxu0 %v752_v0  ;;  %v160_v29 = vand.u32 4294901760, %v159_v25  ;;  %v178_v35 = vand.u32 4294901760, %v177_v31  ;;  %v184_v36 = vand.u32 4294901760, %v183_v34 }
  0x26   :  { %606 = vmatpush3.msra.mxu0 %v790_v9  ;;  %v127_v32 = vand.u32 4294901760, %v126_v28 }
  0x27   :  { %611 = vmatpush3.msra.mxu1 %v160_v29  ;;  %623 = vmatprep.subr.mxu0 %v752_v0 }
  0x28   :  { %612 = vmatprep.subr.mxu1 %v752_v0  ;;  %608 = vmatmul.mubr.f32.vlgmr.msra.gmra.mxu0 %v127_v32 }
  0x29   :  { %613 = vmatpush3.msra.mxu1 %v166_v30  ;;  %624 = vmatpush3.msra.mxu0 %v157_v15 }
  0x2a   :  { %614 = vmatprep.subr.mxu1 %v752_v0  ;;  %625 = vmatprep.subr.mxu0 %v752_v0 }
  0x2b   :  { %615 = vmatpush3.msra.mxu1 %v172_v33  ;;  %626 = vmatpush3.msra.mxu0 %v800_v13 }
  0x2c   :  { %616 = vmatprep.subr.mxu1 %v752_v0  ;;  %627 = vmatprep.subr.mxu0 %v752_v0 }
  0x2d   :  { %617 = vmatpush3.msra.mxu1 %v178_v35  ;;  %628 = vmatpush3.msra.mxu0 %v804_v14 }
  0x2e   :  { %618 = vmatprep.subr.mxu1 %v752_v0  ;;  %629 = vmatprep.subr.mxu0 %v752_v0 }
  0x2f   :  { %619 = vmatpush3.msra.mxu1 %v184_v36  ;;  %630 = vmatpush3.msra.mxu0 %v809_v16 }
  0x30   :  { %621 = vmatmul.mubr.f32.vlgmr.msra.gmra.mxu1 %v796_v12  ;;  %631 = vmatprep.subr.mxu0 %v752_v0 }
  0x31   :  { %636 = vmatprep.subr.mxu1 %v752_v0  ;;  %632 = vmatpush3.msra.mxu0 %v813_v17 }
  0x32   :  { %633 = vmatprep.mubr.msk.f32.mxu0 %vm753_vm0, %v752_v0  ;;  %637 = vmatpush3.msk.msra.mxu1 %vm53_vm2, %v782_v4 }
  0x33   :  { %634 = vmatmul.mubr.f32.vlgmr.msra.gmra.mxu0 %v817_v18  ;;  %638 = vmatprep.subr.mxu1 %v752_v0 }
  0x34   :  { %649 = vmatprep.subr.mxu0 %v752_v0  ;;  %639 = vmatpush3.msra.mxu1 %v784_v5 }
  0x35   :  { %650 = vmatpush3.msra.mxu0 %v158_v21  ;;  %640 = vmatprep.subr.mxu1 %v752_v0 }
  0x36   :  { %651 = vmatprep.subr.mxu0 %v752_v0  ;;  %641 = vmatpush3.msra.mxu1 %v786_v6 }
  0x37   :  { %652 = vmatpush3.msra.mxu0 %v164_v19  ;;  %642 = vmatprep.subr.mxu1 %v752_v0 }
  0x38   :  { %653 = vmatprep.subr.mxu0 %v752_v0  ;;  %643 = vmatpush3.msra.mxu1 %v788_v7 }
  0x39   :  { %654 = vmatpush3.msra.mxu0 %v170_v20  ;;  %644 = vmatprep.subr.mxu1 %v752_v0 }
  0x3a   :  { %655 = vmatprep.subr.mxu0 %v752_v0  ;;  %645 = vmatpush3.msra.mxu1 %v790_v9 }
  0x3b   :  { %646 = vmatprep.mubr.msk.f32.mxu1 %vm753_vm0, %v752_v0  ;;  %656 = vmatpush3.msra.mxu0 %v176_v22 }
  0x3c   :  { %647 = vmatmul.mubr.f32.vlgmr.msra.gmra.mxu1 %v125_v23  ;;  %657 = vmatprep.subr.mxu0 %v752_v0 }
  0x3d   :  { %662 = vmatprep.subr.mxu1 %v752_v0  ;;  %658 = vmatpush3.msra.mxu0 %v182_v27 }
  0x3e   :  { %659 = vmatprep.mubr.msk.f32.mxu0 %vm753_vm0, %v752_v0  ;;  %663 = vmatpush3.msk.msra.mxu1 %vm53_vm2, %v782_v4 }
  0x3f   :  { %660 = vmatmul.mubr.f32.vlgmr.msra.gmra.mxu0 %v796_v12  ;;  %664 = vmatprep.subr.mxu1 %v752_v0 }
  0x40   :  { %665 = vmatpush3.msra.mxu1 %v784_v5  ;;  %672 = vmatprep.mubr.msk.f32.mxu1 %vm753_vm0, %v752_v0 }
  0x41   :  { %666 = vmatprep.subr.mxu1 %v752_v0 }
  0x42   :  { %667 = vmatpush3.msra.mxu1 %v786_v6 }
  0x43   :  { %668 = vmatprep.subr.mxu1 %v752_v0 }
  0x44   :  { %669 = vmatpush3.msra.mxu1 %v788_v7 }
  0x45   :  { %670 = vmatprep.subr.mxu1 %v752_v0 }
  0x46   :  { %671 = vmatpush3.msra.mxu1 %v790_v9 }
  0x47   :  { %673 = vmatmul.mubr.f32.vlgmr.msra.gmra.mxu1 %v796_v12 }
  0xe8   :  { %v129_v37 = vpop.f32.mrf.mxu0 }
  0xea   :  { %v609_v38 = vpop.f32.mrf.mxu0 }
  0xf0   :  { %v221_v39 = vpop.f32.mrf.mxu1 }
  0xf1   :  { %v222_v43 = vadd.f32 %v221_v39, %v129_v37 }
  0xf2   :  { %v622_v40 = vpop.f32.mrf.mxu1 }
  0xf3   :  { %v299_v41 = vpop.f32.mrf.mxu0 }
  0xf4   :  { %v300_v47 = vadd.f32 %v299_v41, %v222_v43 }
  0xf5   :  { %v635_v42 = vpop.f32.mrf.mxu0 }
  0xfc   :  { %v373_v44 = vpop.f32.mrf.mxu1 }
  0xfd   :  { %v374_v49 = vadd.f32 %v373_v44, %v300_v47 }
  0xfe   :  { %v648_v45 = vpop.f32.mrf.mxu1 }
  0xff   :  { %v455_v46 = vpop.f32.mrf.mxu0 }
 0x100   :  { %v456_v50 = vadd.f32 %v455_v46, %v374_v49 }
 0x101   :  { %v661_v48 = vpop.f32.mrf.mxu0 }
 0x107   :  { %v527_v51 = vpop.f32.mrf.mxu1 }
 0x108   :  { %v528_v52 = vadd.f32 %v527_v51, %v456_v50 }
 0x109   :  { %v674_v53 = vpop.f32.mrf.mxu1 }
 0x10a   :  { %532 = vst.msk [vmem:[#allocation7] sm:$0x3] %vm531_vm3, %v528_v52 }
 0x10b   :  { %733 = shalt.err (!%p730_p0)
}
 0x10c   :  { %542 = dma.vmem_to_hbm [thread:$0]  %s540_s1, 32, %s892_s2, [#allocation4]  }
 0x10d   :  { %746 = dma.done.wait [#allocation4], 32  }
 0x10e   :  { %747 = vsyncadd [#allocation4], 4294967264 }
 0x10f   :  { %546 = vsyncpa [#allocation3], 1 }
 0x110   :  { %547 = vsyncpa [#allocation6], 1 }
 0x111   :  { %548 = vsyncpa [#allocation4], 1 }

</bundles_post_ra>
